<compile_context>
chip_gen: v7x
topology: tpu7x:2x2x1
jax: 0.10.0
libtpu: 0.0.40
codegen_flags: <defaults>
</compile_context>

<pallas_src>
import functools

import jax
import jax.numpy as jnp
from jax import lax
from jax.experimental import pallas as pl
from jax.experimental.pallas import tpu as pltpu


_VMEM_LIMIT = 48 * 1024 * 1024  # explicit scoped-VMEM budget (fits v7x's 64 MiB physical)


# ---------------------------------------------------------------------------
# Kernels
# ---------------------------------------------------------------------------

def _linear_kernel(x_ref, w_ref, b_ref, o_ref):
    """o = x @ w + b for one (tm, Hin) x (Hin, tn) tile pair; f32 accumulation on the MXU."""
    y = jnp.dot(x_ref[...], w_ref[...], preferred_element_type=jnp.float32)
    o_ref[...] = (y + b_ref[...].astype(jnp.float32)).astype(o_ref.dtype)


def _sdpa_heads(q, k, v, o_ref, heads, head_dim):
    """softmax(q_h k_h^T) v_h for `heads` heads packed along the lane axis.

    q, k, v: (S, heads*head_dim) 2-D VMEM blocks (Q already pre-scaled by 1/sqrt(Dh)).
    Writes each head's (S, head_dim) output into o_ref[0, :, h*Dh:(h+1)*Dh].
    """
    for h in range(heads):
        sl = slice(h * head_dim, (h + 1) * head_dim)
        qh, kh, vh = q[:, sl], k[:, sl], v[:, sl]
        # s = q @ k^T (contract on Dh), f32 accumulation; no transpose materialized.
        s = lax.dot_general(qh, kh, (((1,), (1,)), ((), ())),
                            preferred_element_type=jnp.float32)          # (S, S) f32
        # Numerically stable softmax with deferred normalization: normalize the (S, Dh)
        # output with an EUP reciprocal instead of dividing the (S, S) prob matrix.
        p = jnp.exp(s - jnp.max(s, axis=-1, keepdims=True))
        inv_l = pl.reciprocal(jnp.sum(p, axis=-1, keepdims=True), approx=True)
        oh = jnp.dot(p.astype(vh.dtype), vh, preferred_element_type=jnp.float32) * inv_l
        o_ref[0, :, sl] = oh.astype(o_ref.dtype)
    # TODO(synk): training-mode dropout on attention probs (pltpu.prng_random_bits mask).
    # TODO(synk): flash-style (q-block, kv-block) online-softmax tiling for long sequences
    #             (the full SxS score matrix caps S by VMEM as written).


def _attn_grouped_kernel(q_ref, k_ref, v_ref, o_ref, *, heads, head_dim):
    """One (batch, head-group) step; blocks are (1, S, heads*head_dim) with 128-multiple lanes."""
    _sdpa_heads(q_ref[0], k_ref[0], v_ref[0], o_ref, heads, head_dim)


def _attn_fullrow_kernel(qkv_ref, o_ref, *, num_heads, head_dim):
    """Fallback for small H (no 128-multiple head packing possible): one batch row per step."""
    h_total = num_heads * head_dim
    blk = qkv_ref[0]                                                     # (S, 3H)
    _sdpa_heads(blk[:, :h_total], blk[:, h_total:2 * h_total], blk[:, 2 * h_total:3 * h_total],
                o_ref, num_heads, head_dim)


# ---------------------------------------------------------------------------
# Tiling helpers
# ---------------------------------------------------------------------------

def _round_up(x, m):
    return (x + m - 1) // m * m


def _pick_row_tile(rows, target, min_steps=2):
    """Row tile: multiple of 8, <= target, and small enough for >= min_steps grid steps
    (keeps both v7x TensorCores busy). Caller zero-pads rows up to a multiple of the tile."""
    tm = max(8, _round_up(-(-rows // min_steps), 8))
    return min(tm, max(8, _round_up(target, 8)))


def _pick_col_tile(cols, target):
    """Column tile: largest multiple of 128 that divides cols and is <= target; else full cols
    (valid because a block equal to the full array dim satisfies the (8,128) rule)."""
    if cols % 128 != 0:
        return cols
    best, t = 128, 128
    limit = min(cols, max(128, target))
    while t <= limit:
        if cols % t == 0:
            best = t
        t += 128
    return best


def _pick_head_group(num_heads, head_dim, lane_target=512):
    """Heads per attention block so the block lane width is a multiple of 128 (None if impossible)."""
    valid = [g for g in range(1, num_heads + 1)
             if num_heads % g == 0 and (g * head_dim) % 128 == 0]
    if not valid:
        return None
    within = [g for g in valid if g * head_dim <= max(128, lane_target)]
    return max(within) if within else min(valid)


# ---------------------------------------------------------------------------
# Wrappers
# ---------------------------------------------------------------------------

def _linear(x, w, b, *, row_tile_target=512, col_tile_target=512, out_dtype=None):
    """y = x @ w + b with a (col-tile, row-tile) parallel grid.

    x: (rows, Hin), w: (Hin, Hout), b: (Hout,) (bias kept f32).
    Only (Hin, tn) weight slices are resident per step, so the kernel stays within the
    default scoped-VMEM limits (16 MiB v5e / 32 MiB v6e/v7x) even for large Hout.
    """
    rows, h_in = x.shape
    h_out = w.shape[1]
    out_dtype = x.dtype if out_dtype is None else out_dtype

    tn = _pick_col_tile(h_out, col_tile_target)
    tm = _pick_row_tile(rows, row_tile_target)
    padded_rows = _round_up(rows, tm)
    x_p = x if padded_rows == rows else jnp.pad(x, ((0, padded_rows - rows), (0, 0)))

    n_col, n_row = h_out // tn, padded_rows // tm

    y = pl.pallas_call(
        _linear_kernel,
        out_shape=jax.ShapeDtypeStruct((padded_rows, h_out), out_dtype),
        grid_spec=pltpu.PrefetchScalarGridSpec(
            num_scalar_prefetch=0,
            grid=(n_col, n_row),                      # weight slice stays resident over row tiles
            in_specs=[
                pl.BlockSpec((tm, h_in), lambda j, i: (i, 0)),   # streamed activation rows
                pl.BlockSpec((h_in, tn), lambda j, i: (0, j)),   # weight column slice
                pl.BlockSpec((1, tn), lambda j, i: (0, j)),      # bias slice (f32)
            ],
            out_specs=pl.BlockSpec((tm, tn), lambda j, i: (i, j)),
        ),
        compiler_params=pltpu.CompilerParams(
            dimension_semantics=("parallel", "parallel"),
            vmem_limit_bytes=_VMEM_LIMIT,
        ),
    )(x_p, w, b.reshape(1, h_out))
    return y if padded_rows == rows else y[:rows]


def attention_forward(hidden_states, wq, bq, wk, bk, wv, bv, wo, bo, *,
                      num_heads, compute_dtype=None,
                      row_tile_target=512, col_tile_target=512, head_lane_target=512):
    """Eval-mode multi-head self-attention matching PyTorch `Attention.forward` defaults.

    hidden_states: (B, S, H); weights in PyTorch nn.Linear layout (out, in); biases (out,).
    compute_dtype=jnp.bfloat16 casts activations/weights once at this boundary (halves HBM
    traffic, native MXU rate); softmax/accumulation stay f32 in-kernel; output is returned
    in the input dtype.
    """
    B, S, H = hidden_states.shape
    if H % num_heads:
        raise ValueError("embed_dim must be divisible by num_heads")
    Dh = H // num_heads
    scaling = Dh ** -0.5
    rows = B * S
    in_dtype = hidden_states.dtype
    cdt = in_dtype if compute_dtype is None else compute_dtype

    # One-time boundary work (not per grid step): transpose weights to (in, out), fold the
    # query scaling into Wq/bq, fuse Q/K/V into a single weight, cast to the compute dtype.
    w_qkv = jnp.concatenate([wq.T * scaling, wk.T, wv.T], axis=1).astype(cdt)   # (H, 3H)
    b_qkv = jnp.concatenate([bq * scaling, bk, bv], axis=0).astype(jnp.float32)  # (3H,)
    w_out = wo.T.astype(cdt)
    b_out = bo.astype(jnp.float32)

    x2 = hidden_states.reshape(rows, H).astype(cdt)

    # 1) fused QKV projection
    qkv = _linear(x2, w_qkv, b_qkv, row_tile_target=row_tile_target,
                  col_tile_target=col_tile_target, out_dtype=cdt)                # (rows, 3H)
    qkv3 = qkv.reshape(B, S, 3 * H)                                              # free reshape

    # 2) scaled-dot-product attention reading Q/K/V straight out of the fused qkv array and
    #    writing directly in (B, S, H) order — no HBM transposes.
    # TODO(synk): attention_mask / layer_head_mask / cross-attention / KV-cache /
    #             output_attentions branches of the PyTorch forward.
    hg = _pick_head_group(num_heads, Dh, head_lane_target)
    if hg is not None:
        block_w = hg * Dh                       # multiple of 128 -> lane-dense blocks/stores
        n_grp = num_heads // hg                 # Q col-blocks [0,n_grp), K [n_grp,2n), V [2n,3n)
        attn = pl.pallas_call(
            functools.partial(_attn_grouped_kernel, heads=hg, head_dim=Dh),
            out_shape=jax.ShapeDtypeStruct((B, S, H), cdt),
            grid_spec=pltpu.PrefetchScalarGridSpec(
                num_scalar_prefetch=0,
                grid=(B, n_grp),
                in_specs=[
                    pl.BlockSpec((1, S, block_w), lambda b, g: (b, 0, g)),
                    pl.BlockSpec((1, S, block_w), lambda b, g: (b, 0, n_grp + g)),
                    pl.BlockSpec((1, S, block_w), lambda b, g: (b, 0, 2 * n_grp + g)),
                ],
                out_specs=pl.BlockSpec((1, S, block_w), lambda b, g: (b, 0, g)),
            ),
            compiler_params=pltpu.CompilerParams(
                dimension_semantics=("parallel", "parallel"),
                vmem_limit_bytes=_VMEM_LIMIT,
            ),
        )(qkv3, qkv3, qkv3)
    else:
        # Small-H fallback: one full (S, 3H) row block per batch (block = full array dims,
        # so the (8,128) rule holds for any H); heads sliced inside the kernel.
        attn = pl.pallas_call(
            functools.partial(_attn_fullrow_kernel, num_heads=num_heads, head_dim=Dh),
            out_shape=jax.ShapeDtypeStruct((B, S, H), cdt),
            grid_spec=pltpu.PrefetchScalarGridSpec(
                num_scalar_prefetch=0,
                grid=(B,),
                in_specs=[pl.BlockSpec((1, S, 3 * H), lambda b: (b, 0, 0))],
                out_specs=pl.BlockSpec((1, S, H), lambda b: (b, 0, 0)),
            ),
            compiler_params=pltpu.CompilerParams(
                dimension_semantics=("parallel",),
                vmem_limit_bytes=_VMEM_LIMIT,
            ),
        )(qkv3)

    # 3) output projection (attn is already in head-concatenated (B, S, H) layout)
    out = _linear(attn.reshape(rows, H), w_out, b_out, row_tile_target=row_tile_target,
                  col_tile_target=col_tile_target, out_dtype=in_dtype)           # (rows, H)
    return out.reshape(B, S, H)


# ---------------------------------------------------------------------------
# Pure-JAX reference + test
# ---------------------------------------------------------------------------

def _reference(hidden_states, wq, bq, wk, bk, wv, bv, wo, bo, num_heads):
    B, S, H = hidden_states.shape
    Dh = H // num_heads
    scaling = Dh ** -0.5

    def shape(t):
        return t.reshape(B, S, num_heads, Dh).transpose(0, 2, 1, 3)

    q = shape((hidden_states @ wq.T + bq) * scaling)
    k = shape(hidden_states @ wk.T + bk)
    v = shape(hidden_states @ wv.T + bv)
    s = jnp.einsum("bhqd,bhkd->bhqk", q, k)
    p = jax.nn.softmax(s, axis=-1)
    o = jnp.einsum("bhqk,bhkd->bhqd", p, v)
    o = o.transpose(0, 2, 1, 3).reshape(B, S, H)
    return o @ wo.T + bo


if __name__ == "__main__":
    def run_case(seed_key, B, S, H, num_heads, compute_dtype=None, atol=2e-3, rtol=2e-3):
        keys = jax.random.split(seed_key, 9)
        hidden = jax.random.normal(keys[0], (B, S, H), dtype=jnp.float32)

        def linear_params(kw, kb, fan_in, fan_out):
            bound = 1.0 / (fan_in ** 0.5)
            w = jax.random.uniform(kw, (fan_out, fan_in), jnp.float32, -bound, bound)
            b = jax.random.uniform(kb, (fan_out,), jnp.float32, -bound, bound)
            return w, b

        wq, bq = linear_params(keys[1], keys[2], H, H)
        wk, bk = linear_params(keys[3], keys[4], H, H)
        wv, bv = linear_params(keys[5], keys[6], H, H)
        wo, bo = linear_params(keys[7], keys[8], H, H)

        out = attention_forward(hidden, wq, bq, wk, bk, wv, bv, wo, bo,
                                num_heads=num_heads, compute_dtype=compute_dtype)
        out = jax.block_until_ready(out)
        ref = _reference(hidden, wq, bq, wk, bk, wv, bv, wo, bo, num_heads)
        assert out.shape == (B, S, H)
        assert jnp.allclose(out.astype(jnp.float32), ref, atol=atol, rtol=rtol), (
            f"mismatch vs reference (B={B}, S={S}, H={H}, heads={num_heads}, "
            f"compute_dtype={compute_dtype})")

    k0, k1, k2 = jax.random.split(jax.random.PRNGKey(0), 3)
    # Main path: head-grouped attention (Dh=64 -> heads packed into 128-multiple lane blocks).
    run_case(k0, B=2, S=16, H=256, num_heads=4)
    # bf16 compute path (boundary cast; f32 softmax/accumulation), looser tolerance.
    run_case(k1, B=2, S=16, H=256, num_heads=4, compute_dtype=jnp.bfloat16, atol=0.1, rtol=0.1)
    # Small-H fallback path (no 128-multiple head grouping possible).
    run_case(k2, B=2, S=8, H=32, num_heads=4)

    print("KERNEL_OK")
</pallas_src>

<mosaic_0001>
module attributes {stable_mosaic.version = 11 : i64} {
  func.func @_linear_kernel(%arg0: i32, %arg1: i32, %arg2: memref<16x256xf32, #tpu.memory_space<vmem>>, %arg3: memref<256x384xf32, #tpu.memory_space<vmem>>, %arg4: memref<1x384xf32, #tpu.memory_space<vmem>>, %arg5: memref<16x384xf32, #tpu.memory_space<vmem>>) attributes {dimension_semantics = [#tpu.dimension_semantics<parallel>, #tpu.dimension_semantics<parallel>], iteration_bounds = array<i64: 2, 2>, scalar_prefetch = 0 : i64, scratch_operands = 0 : i64, tpu.core_type = #tpu.core_type<tc>, window_params = [{transform_indices = @transform_0, window_bounds = array<i64: 16, 256>}, {transform_indices = @transform_1, window_bounds = array<i64: 256, 384>}, {transform_indices = @transform_2, window_bounds = array<i64: 1, 384>}, {transform_indices = @transform_3, window_bounds = array<i64: 16, 384>}]} {
    %c0 = arith.constant 0 : index
    %c0_0 = arith.constant 0 : index
    %0 = vector.load %arg2[%c0, %c0_0] : memref<16x256xf32, #tpu.memory_space<vmem>>, vector<16x256xf32>
    %c0_1 = arith.constant 0 : index
    %c0_2 = arith.constant 0 : index
    %1 = vector.load %arg3[%c0_1, %c0_2] : memref<256x384xf32, #tpu.memory_space<vmem>>, vector<256x384xf32>
    %cst = arith.constant dense<0.000000e+00> : vector<16x384xf32>
    %2 = tpu.matmul %0, %1, %cst {dimension_numbers = #tpu.dot_dimension_numbers<[1], [0], [0], [1], [0, 0, 1, 1], [], []>} : vector<16x256xf32>, vector<256x384xf32>, vector<16x384xf32> -> vector<16x384xf32>
    %c0_3 = arith.constant 0 : index
    %c0_4 = arith.constant 0 : index
    %3 = vector.load %arg4[%c0_3, %c0_4] : memref<1x384xf32, #tpu.memory_space<vmem>>, vector<1x384xf32>
    %4 = vector.broadcast %3 : vector<1x384xf32> to vector<16x384xf32>
    %5 = arith.addf %2, %4 : vector<16x384xf32>
    %c0_5 = arith.constant 0 : index
    %c0_6 = arith.constant 0 : index
    %6 = vector.load %arg5[%c0_5, %c0_6] : memref<16x384xf32, #tpu.memory_space<vmem>>, vector<16x384xf32>
    tpu.vector_store %arg5[%c0_5, %c0_6], %5 {strides = array<i32>} : memref<16x384xf32, #tpu.memory_space<vmem>>, vector<16x384xf32>,
    return
  }
  func.func @transform_0(%arg0: i32, %arg1: i32) -> (i32, i32) {
    %c0_i32 = arith.constant 0 : i32
    %c0_i32_0 = arith.constant 0 : i32
    return %arg1, %c0_i32 : i32, i32
  }
  func.func @transform_1(%arg0: i32, %arg1: i32) -> (i32, i32) {
    %c0_i32 = arith.constant 0 : i32
    %c0_i32_0 = arith.constant 0 : i32
    return %c0_i32, %arg0 : i32, i32
  }
  func.func @transform_2(%arg0: i32, %arg1: i32) -> (i32, i32) {
    %c0_i32 = arith.constant 0 : i32
    %c0_i32_0 = arith.constant 0 : i32
    return %c0_i32, %arg0 : i32, i32
  }
  func.func @transform_3(%arg0: i32, %arg1: i32) -> (i32, i32) {
    %c0_i32 = arith.constant 0 : i32
    return %arg1, %arg0 : i32, i32
  }
}

</mosaic_0001>

<bundles_post_ra>
// kernel: tpu_custom_call.1
= control target key start
LH: loop header
LB: loop body
LE: loop exit
PB: predicated region body
PF: predicated region fallthrough
CT: control target
= control target key end

     0   :  { %s1664_s0 = inlined_call_operand.hbm [shape: f32[32,256], index: 0, kind: input, shape index: {}]   ;;  %s1665_s1 = inlined_call_operand.hbm [shape: f32[256,768], index: 1, kind: input, shape index: {}]   ;;  %s1666_s2 = inlined_call_operand.vmem [shape: f32[1,768], index: 2, kind: input, shape index: {}]   ;;  %s1667_s3 = inlined_call_operand.hbm [shape: f32[32,768], index: 3, kind: output, shape index: {}]  }
   0x1   :  { %1678 = sst [smem:[#allocation17_spill]] %s1664_s0 }
   0x2   :  { %1679 = sst [smem:[#allocation18_spill]] %s1667_s3 }
   0x3   :  { %8 = vsyncpa [#allocation3], 0 }
   0x4   :  { %10 = vsyncpa [#allocation3 + $0x1], 0 }
   0x5   :  { %11 = vsyncpa [#allocation6], 0 }
   0x6   :  { %13 = vsyncpa [#allocation6 + $0x1], 0 }
   0x7   :  { %14 = vsyncpa [#allocation4], 0 }
   0x8   :  { %16 = vsyncpa [#allocation4 + $0x1], 0  ;;  %s1217_s12 = smov 0   ;;  %s1219_s13 = smov 0  }
   0x9   :  { %s1221_s14 = smov 0   ;;  %s1223_s15 = smov 0  }
   0xa   :  { %s1225_s16 = smov 0   ;;  %s1227_s17 = smov 0  }
   0xb   :  { %s1229_s18 = smov 0   ;;  %s1231_s19 = smov 0  }
   0xc   :  { %s1233_s20 = smov 0   ;;  %s1235_s21 = smov 0  }
   0xd   :  { %s1237_s22 = smov 0   ;;  %s1239_s23 = smov 0  }
   0xe   :  { %s1241_s24 = smov 0   ;;  %s1243_s25 = smov 0  }
   0xf LB: > { %1680 = sst [smem:[#allocation11_spill]] %s1176_s23  ;;  %s678_s26 = sadd.s32 4294967295, %s1184_s25   ;;  %s1184_s25 = sphi %s1243_s25, %s22_s25   ;;  %s1180_s24 = sphi %s1241_s24, %s1710_s24   ;;  %s1176_s23 = sphi %s1239_s23, %s1709_s23   ;;  %s1172_s22 = sphi %s1237_s22, %s1708_s22   ;;  %s1168_s21 = sphi %s1235_s21, %s1707_s21   ;;  %s1164_s20 = sphi %s1233_s20, %s1719_s20   ;;  %s1160_s19 = sphi %s1231_s19, %s1718_s19   ;;  %s1156_s18 = sphi %s1229_s18, %s1717_s18   ;;  %s1152_s17 = sphi %s1227_s17, %s1716_s17   ;;  %s1148_s16 = sphi %s1225_s16, %s1715_s16   ;;  %s1144_s15 = sphi %s1223_s15, %s1714_s15   ;;  %s1140_s14 = sphi %s1221_s14, %s1713_s14   ;;  %s1136_s13 = sphi %s1219_s13, %s1712_s13   ;;  %s1132_s12 = sphi %s1217_s12, %s1711_s12  }
  0x10   : > { %1681 = sst [smem:[#allocation12_spill]] %s1180_s24  ;;  %s679_s27 = sadd.s32 4294967294, %s1184_s25  }
  0x11   : > { %s31_s28 = sadd.s32 1, %s1176_s23  ;;  %s34_s29 = sadd.s32 1, %s1180_s24 }
  0x12   : > { %p32_p0 = scmp.ge.s32.totalorder %s31_s28, 2  ;;  %s41_s30 = sadd.s32 1, %s1164_s20 }
  0x13   : > { %p48_p1 = scmp.ne.s32.totalorder %s1164_s20, %s1160_s19  ;;  %p1673_p2 = scmp.eq.s32.totalorder %s1184_s25, 0 }
  0x14   : > { %s1721_s28 = smov (%p32_p0, %s31_s28), 0  ;;  %s1723_s29 = smov (!%p32_p0, %s34_s29), %s1180_s24 }
  0x15   : > { %1682 = sst [smem:[#allocation13_spill]] %s1721_s28  ;;  %s38_s4 = ssub.s32 %s1176_s23, %s1721_s28 }
  0x16   : > { %p1300_p3 = por %p1673_p2, %p48_p1  ;;  %p36_p4 = scmp.ge.s32.totalorder %s1723_s29, 2 }
  0x17   : > { %p39_p5 = scmp.eq.s32.totalorder %s38_s4, 0  ;;  %p54_p6 = scmp.ne.s32.totalorder %s1160_s19, %s1156_s18 }
  0x18   : > { %p1305_p7 = scmp.eq.s32.totalorder %s678_s26, 0  ;;  %s1725_s29 = smov (%p36_p4, %s1723_s29), 0 }
  0x19   : > { %1685 = sst [smem:[#allocation14_spill]] %s1725_s29  ;;  %s1322_s9 = ssub.s32 %s1180_s24, %s1725_s29 }
  0x1a   : > { %s1312_s7 = scalar_select %p39_p5, %s1164_s20, %s41_s30  }
  0x1b   : > { %p1316_p8 = por %p1305_p7, %p54_p6  ;;  %s118_s10 = sor.u32 %s1322_s9, %s38_s4 }
  0x1c   : > { %1686 = sst [smem:[#allocation15_spill]] %s1312_s7  ;;  %p119_p10 = scmp.eq.s32.totalorder %s118_s10, 0 }
  0x1d   : > { %s1687_s8 = scalar_select %p1316_p8, 1, 0 }
  0x1e   : > { %s121_s11 = sadd.s32 1, %s1140_s14  ;;  %p131_p11 = scmp.ne.s32.totalorder %s1140_s14, %s1136_s13 }
  0x1f   : > { %p132_p12 = scmp.eq.s32.totalorder %s678_s26, 3  ;;  %p137_p0 = scmp.ne.s32.totalorder %s1136_s13, %s1132_s12 }
  0x20   : > { %s1330_s18 = scalar_select %p119_p10, %s1140_s14, %s121_s11  }
  0x21   : > { %p1332_p13 = por %p132_p12, %p131_p11  ;;  %p138_p1 = scmp.eq.s32.totalorder %s679_s27, 3 }
  0x22   : > { %1688 = sst [smem:[#allocation16_spill]] %s1330_s18  ;;  %p1672_p4 = scmp.lt.s32.totalorder %s1184_s25, 4 }
  0x23   : > { %s1689_s30 = scalar_select %p1332_p13, 1, 0 }
  0x24   : > { %s158_s29 = sand.u32 1, %s1164_s20   ;;  %p1340_p5 = por %p138_p1, %p137_p0 }
  0x25   : > { %s682_s4 = sshll.u32 %s158_s29, 5  ;;  %s695_s10 = sshll.u32 %s1176_s23, 9 }
  0x26   : > { %s1690_s28 = scalar_select %p1340_p5, 1, 0 }
  0x27   : > { %s1691_s0 = sld [smem:[#allocation17_spill]]  ;;  %s162_s11 = scalar_lea.vmem [#allocation2], %s682_s4 }
  0x28   : > { %s170_s18 = sshll.u32 %s162_s11, 4  ;;  %p1354_p6 = pnand %p1672_p4, %p1300_p3  ;;  %s1358_s18 = int_to_ptr.vmem [resolvable:$true] %s170_s18 }
  0x29   : > { %s1360_s23 = scalar_lea.sflag [#allocation3], %s158_s29 }
  0x2a   : > { %p976_p11 = pneg %p1354_p6 }
  0x2d   : > { %s1348_s26 = scalar_lea.hbm %s1691_s0, %s695_s10  ;;  %s979_s4 = scalar_lea.hbm %s1691_s0, 1024 }
  0x2e   : > { %s974_s3 = scalar_lea.hbm %s1348_s26, 512  ;;  %p980_p3 = scmp.lt.u32.totalorder %s1348_s26, %s1691_s0 }
  0x2f   : > { %p975_p10 = scmp.ne.s32.totalorder %s1348_s26, %s974_s3  ;;  %p981_p1 = scmp.lt.u32.totalorder %s979_s4, %s974_s3 }
  0x30   : > { %p983_p2 = scmp.lt.u32.totalorder %s974_s3, %s1348_s26 }
  0x31   : > { %p977_p12 = pnand %p976_p11, %p975_p10  ;;  %p982_p4 = por %p981_p1, %p980_p3 }
  0x33   : > { %p978_p0 = pneg %p977_p12  ;;  %p984_p9 = por %p983_p2, %p982_p4 }
  0x35   : > { %p985_p5 = pnand %p984_p9, %p978_p0 }
  0x37   : > { %988 = shalt.err (!%p985_p5)
}
  0x38   : > { %s989_s29 = scalar_lea.vmem %s1358_s18, 512  ;;  %s1186_s5 = smov [#allocation2]  }
  0x39   : > { %p990_p10 = scmp.ne.s32.totalorder %s1358_s18, %s989_s29  ;;  %s994_s7 = sshll.u32 %s1186_s5, 4  ;;  %s995_s7 = int_to_ptr.vmem [resolvable:$false] %s994_s7 }
  0x3a   : > { %s996_s10 = scalar_lea.vmem %s995_s7, 1024  ;;  %p997_p8 = scmp.lt.s32.totalorder %s1358_s18, %s995_s7 }
  0x3b   : > { %p992_p12 = pnand %p990_p10, %p976_p11  ;;  %p998_p3 = scmp.lt.s32.totalorder %s996_s10, %s989_s29 }
  0x3d   : > { %p993_p13 = pneg %p992_p12  ;;  %p999_p1 = por %p998_p3, %p997_p8 }
  0x3f   : > { %p1000_p2 = pnand %p999_p1, %p993_p13 }
  0x41   : > { %1003 = shalt.err (!%p1000_p2)
}
  0x42   : > { %s1187_s3 = smov 256   ;;  %s1188_s4 = smov 16  }
  0x43   : > { %844 = dma.hbm_to_vmem [thread:$0]  (!%p1354_p6), %s1348_s26, 512, %s1358_s18, %s1360_s23, %s1187_s3, %s1187_s3, %s1188_s4  }
  0x44   : > { %p687_p8 = scmp.ge.s32.totalorder %s1184_s25, 1  ;;  %p207_p9 = scmp.lt.s32.totalorder %s1184_s25, 5 }
  0x45   : > { %s67_s29 = sadd.s32 1, %s1152_s17  ;;  %p1694_p4 = scmp.eq.s32.totalorder %s1322_s9, 0 }
  0x46   : > { %p1390_p13 = pnand %p687_p8, %p207_p9  ;;  %p74_p5 = scmp.ne.s32.totalorder %s1152_s17, %s1148_s16 }
  0x47   : > { %s1398_s5 = scalar_select %p1694_p4, %s1152_s17, %s67_s29  }
  0x48   : > { %p80_p11 = scmp.ne.s32.totalorder %s1148_s16, %s1144_s15  ;;  %s180_s7 = sand.u32 1, %s1152_s17  }
  0x49   : > { %s696_s10 = smul.u32 384, %s1180_s24  ;;  %p1695_p0 = scmp.eq.s32.totalorder %s1184_s25, 0 }
  0x4a   : > { %p1410_p12 = por %p80_p11, %p1305_p7  ;;  %s831_s23 = smul.u32 768, %s180_s7 }
  0x4b   : > { %p76_p10 = por %p74_p5, %p1695_p0  ;;  %s1417_s3 = scalar_lea.hbm %s1665_s1, %s696_s10 }
  0x4c   : > { %s1696_s27 = scalar_select %p1410_p12, 1, 0 }
  0x4d   : > { %p1697_p6 = scmp.lt.s32.totalorder %s1184_s25, 4  ;;  %s184_s6 = scalar_lea.vmem [#allocation5], %s831_s23 }
  0x4e   : > { %s191_s9 = sshll.u32 %s184_s6, 4  ;;  %s1427_s4 = scalar_lea.sflag [#allocation6], %s180_s7  ;;  %s1425_s9 = int_to_ptr.vmem [resolvable:$true] %s191_s9 }
  0x4f   : > { %p1421_p3 = pnand %p1697_p6, %p76_p10  ;;  %s1004_s29 = scalar_lea.hbm %s1417_s3, 12288 }
  0x50   : > { %p1005_p7 = scmp.ne.s32.totalorder %s1417_s3, %s1004_s29  ;;  %s1009_s26 = scalar_lea.hbm %s1665_s1, 24576 }
  0x51   : > { %p1006_p1 = pneg %p1421_p3  ;;  %p1010_p9 = scmp.lt.u32.totalorder %s1417_s3, %s1665_s1 }
  0x52   : > { %p1011_p4 = scmp.lt.u32.totalorder %s1009_s26, %s1004_s29  ;;  %p1013_p11 = scmp.lt.u32.totalorder %s1004_s29, %s1417_s3 }
  0x53   : > { %p1007_p2 = pnand %p1006_p1, %p1005_p7 }
  0x54   : > { %p1012_p5 = por %p1011_p4, %p1010_p9 }
  0x55   : > { %p1008_p8 = pneg %p1007_p2 }
  0x56   : > { %p1014_p0 = por %p1013_p11, %p1012_p5 }
  0x58   : > { %p1015_p10 = pnand %p1014_p0, %p1008_p8 }
  0x5a   : > { %1018 = shalt.err (!%p1015_p10)
}
  0x5b   : > { %s1019_s7 = scalar_lea.vmem %s1425_s9, 12288  ;;  %s1189_s23 = smov [#allocation5]  }
  0x5c   : > { %p1020_p6 = scmp.ne.s32.totalorder %s1425_s9, %s1019_s7  ;;  %s1024_s6 = sshll.u32 %s1189_s23, 4  ;;  %s1025_s6 = int_to_ptr.vmem [resolvable:$false] %s1024_s6 }
  0x5d   : > { %s1026_s0 = scalar_lea.vmem %s1025_s6, 24576  ;;  %p1027_p12 = scmp.lt.s32.totalorder %s1425_s9, %s1025_s6 }
  0x5e   : > { %p1022_p7 = pnand %p1020_p6, %p1006_p1  ;;  %p1028_p9 = scmp.lt.s32.totalorder %s1026_s0, %s1019_s7 }
  0x60   : > { %p1023_p2 = pneg %p1022_p7  ;;  %p1029_p4 = por %p1028_p9, %p1027_p12 }
  0x62   : > { %p1030_p5 = pnand %p1029_p4, %p1023_p2 }
  0x64   : > { %1033 = shalt.err (!%p1030_p5)
}
  0x65   : > { %s1190_s24 = smov 768   ;;  %s1191_s29 = smov 384  }
  0x66   : > { %s1192_s10 = smov 24   ;;  %211 = sbr.rel (%p1390_p13) target bundleno = 417 (0x1a1), region = 32 }
  0x67   : > { %847 = dma.hbm_to_vmem [thread:$0]  (!%p1421_p3), %s1417_s3, 12288, %s1425_s9, %s1427_s4, %s1190_s24, %s1191_s29, %s1192_s10  }
  0x68   : > { %s213_s18 = sand.u32 (!%p1390_p13), 1, %s1160_s19   ;;  %p1699_p12 = scmp.ne.s32.totalorder (!%p1390_p13), %s1687_s8, 0 }
  0x69   : > { %s688_s26 = sshll.u32 (!%p1390_p13), %s213_s18, 5  ;;  %s214_s7 = scalar_lea.sflag (!%p1390_p13), [#allocation3], %s213_s18 }
  0x6a   : > { %s1458_s23 = scalar_lea.vmem (!%p1390_p13), [#allocation2], %s688_s26 }
  0x6d   : > { %1119 = dma.done.wait (%p1699_p12), %s214_s7, 512  }
  0x6e   : > { %1121 = vsyncadd (%p1699_p12), %s214_s7, 4294966784  ;;  %s222_s6 = sand.u32 1, %s1148_s16   ;;  %p1700_p13 = scmp.ne.s32.totalorder %s1696_s27, 0 }
  0x6f   : > { %s832_s15 = smul.u32 768, %s222_s6  ;;  %s223_s3 = scalar_lea.sflag [#allocation6], %s222_s6 }
  0x71   : > { %s1465_s9 = scalar_lea.vmem [#allocation5], %s832_s15 }
  0x72   : > { %1123 = dma.done.wait (%p1700_p13), %s223_s3, 12288  }
  0x73   : > { %1125 = vsyncadd (%p1700_p13), %s223_s3, 4294955008  ;;  %v272_v0 = vld [vmem:[%s1465_s9 + $0x8] sm:$0xff]  ;;  %v275_v1 = vld [vmem:[%s1465_s9 + $0x20] sm:$0xff]  ;;  %s260_s8 = smul.u32 3, %s1172_s22  ;;  %s255_s24 = sand.u32 1, %s1136_s13  }
  0x74   : > { %v271_v2 = vld [vmem:[%s1465_s9] sm:$0xff]  ;;  %v735_v3 = vpack.c.bf16 %v275_v1, %v272_v0  ;;  %v274_v4 = vld [vmem:[%s1465_s9 + $0x18] sm:$0xff]  ;;  %v281_v6 = vld [vmem:[%s1465_s9 + $0x50] sm:$0xff]  ;;  %s833_s29 = smul.u32 48, %s255_s24  ;;  %s1701_s6 = sld [smem:[#allocation18_spill]] }
  0x75   : > { %v278_v5 = vld [vmem:[%s1465_s9 + $0x38] sm:$0xff]  ;;  %v737_v7 = vpack.c.bf16 %v274_v4, %v271_v2  ;;  %v277_v9 = vld [vmem:[%s1465_s9 + $0x30] sm:$0xff]  ;;  %v280_v10 = vld [vmem:[%s1465_s9 + $0x48] sm:$0xff]  ;;  %p261_p3 = scmp.lt.s32.totalorder %s260_s8, 5  ;;  %s834_s10 = smul.u32 12, %s1168_s21 }
  0x76   : > { %v739_v8 = vpack.c.bf16 %v281_v6, %v278_v5  ;;  %v284_v11 = vld [vmem:[%s1465_s9 + $0x68] sm:$0xff]  ;;  %736 = vmatprep.subr.bf16.mxu0 %v735_v3  ;;  %v287_v12 = vld [vmem:[%s1465_s9 + $0x80] sm:$0xff]  ;;  %v741_v13 = vpack.c.bf16 %v280_v10, %v277_v9  ;;  %v286_v16 = vld [vmem:[%s1465_s9 + $0x78] sm:$0xff]  ;;  %s257_s22 = scalar_lea.vmem [#allocation7], %s833_s29  ;;  %s1588_s3 = scalar_lea.sflag [#allocation4], %s255_s24 }
  0x77   : > { %738 = vmatpush1.bf16.msra.mxu0 %v737_v7  ;;  %v743_v14 = vpack.c.bf16 %v287_v12, %v284_v11  ;;  %v283_v15 = vld [vmem:[%s1465_s9 + $0x60] sm:$0xff]  ;;  %v290_v17 = vld [vmem:[%s1465_s9 + $0x98] sm:$0xff]  ;;  %v293_v18 = vld [vmem:[%s1465_s9 + $0xb0] sm:$0xff]  ;;  %s262_s11 = scalar_select %p261_p3, %s260_s8, 5 }
  0x78   : > { %740 = vmatprep.subr.bf16.mxu0 %v739_v8  ;;  %v745_v19 = vpack.c.bf16 %v286_v16, %v283_v15  ;;  %v747_v20 = vpack.c.bf16 %v293_v18, %v290_v17  ;;  %v289_v21 = vld [vmem:[%s1465_s9 + $0x90] sm:$0xff]  ;;  %v292_v22 = vld [vmem:[%s1465_s9 + $0xa8] sm:$0xff]  ;;  %v299_v24 = vld [vmem:[%s1465_s9 + $0xe0] sm:$0xff]  ;;  %s556_s18 = sadd.s32 %s834_s10, %s260_s8  ;;  %s559_s26 = sshll.u32 %s257_s22, 4  ;;  %s1579_s26 = int_to_ptr.vmem [resolvable:$true] %s559_s26 }
  0x79   : > { %v296_v23 = vld [vmem:[%s1465_s9 + $0xc8] sm:$0xff]  ;;  %v321_v25 = vld [vmem:[%s1465_s9 + $0x190] sm:$0xff]  ;;  %v749_v29 = vpack.c.bf16 %v292_v22, %v289_v21  ;;  %v295_v30 = vld [vmem:[%s1465_s9 + $0xc0] sm:$0xff]  ;;  %s263_s0 = scalar_lea.vmem %s1666_s2, %s262_s11  ;;  %s691_s7 = sshll.u32 %s556_s18, 7 }
  0x7a   : > { %v324_v26 = vld [vmem:[%s1465_s9 + $0x1a8] sm:$0xff]  ;;  %v273_v27 = vld [vmem:[%s1465_s9 + $0x10] sm:$0xff]  ;;  %v298_v31 = vld [vmem:[%s1465_s9 + $0xd8] sm:$0xff]  ;;  %v751_v34 = vpack.c.bf16 %v299_v24, %v296_v23  ;;  %s1584_s15 = scalar_lea.hbm %s1701_s6, %s691_s7  ;;  %p1702_p8 = scmp.ne.s32.totalorder %s1689_s30, 0 }
  0x7b   : > { %742 = vmatpush1.bf16.msra.mxu0 %v741_v13  ;;  %v276_v28 = vld [vmem:[%s1465_s9 + $0x28] sm:$0xff]  ;;  %v799_v32 = vpack.c.bf16 %v324_v26, %v321_v25  ;;  %v302_v35 = vld [vmem:[%s1465_s9 + $0xf8] sm:$0xff]  ;;  %v327_v36 = vld [vmem:[%s1465_s9 + $0x1c0] sm:$0xff]  ;;  %v753_v43 = vpack.c.bf16 %v298_v31, %v295_v30  ;;  %s1193_s8 = smov [#allocation7]  }
  0x7c   : > { %744 = vmatprep.subr.bf16.mxu0 %v743_v14  ;;  %v801_v33 = vpack.c.bf16 %v276_v28, %v273_v27  ;;  %v330_v37 = vld [vmem:[%s1465_s9 + $0x1d8] sm:$0xff]  ;;  %v305_v38 = vld [vmem:[%s1465_s9 + $0x110] sm:$0xff]  ;;  %v279_v40 = vld [vmem:[%s1465_s9 + $0x40] sm:$0xff]  ;;  %s1038_s11 = sshll.u32 %s1193_s8, 4  ;;  %s1039_s11 = int_to_ptr.vmem [resolvable:$false] %s1038_s11 }
  0x7d   : > { %800 = vmatprep.subr.bf16.mxu1 %v799_v32  ;;  %v803_v39 = vpack.c.bf16 %v330_v37, %v327_v36  ;;  %v282_v41 = vld [vmem:[%s1465_s9 + $0x58] sm:$0xff]  ;;  %v333_v44 = vld [vmem:[%s1465_s9 + $0x1f0] sm:$0xff]  ;;  %v336_v45 = vld [vmem:[%s1465_s9 + $0x208] sm:$0xff]  ;;  %v755_v47 = vpack.c.bf16 %v305_v38, %v302_v35  ;;  %s1040_s27 = scalar_lea.vmem %s1039_s11, 1536  ;;  %p1041_p10 = scmp.lt.s32.totalorder %s1579_s26, %s1039_s11 }
  0x7e   : > { %802 = vmatpush3.bf16.msra.mxu1 %v801_v33  ;;  %v805_v42 = vpack.c.bf16 %v282_v41, %v279_v40  ;;  %v285_v46 = vld [vmem:[%s1465_s9 + $0x70] sm:$0xff]  ;;  %v304_v49 = vld [vmem:[%s1465_s9 + $0x108] sm:$0xff]  ;;  %v807_v50 = vpack.c.bf16 %v336_v45, %v333_v44  ;;  %v311_v53 = vld [vmem:[%s1465_s9 + $0x140] sm:$0xff] }
  0x7f   : > { %746 = vmatpush1.bf16.msra.mxu0 %v745_v19  ;;  %804 = vmatprep.subr.bf16.mxu1 %v803_v39  ;;  %v301_v48 = vld [vmem:[%s1465_s9 + $0xf0] sm:$0xff]  ;;  %v288_v51 = vld [vmem:[%s1465_s9 + $0x88] sm:$0xff]  ;;  %v339_v54 = vld [vmem:[%s1465_s9 + $0x220] sm:$0xff] }
  0x80   : > { %748 = vmatprep.subr.bf16.mxu0 %v747_v20  ;;  %v308_v52 = vld [vmem:[%s1465_s9 + $0x128] sm:$0xff]  ;;  %v809_v55 = vpack.c.bf16 %v288_v51, %v285_v46  ;;  %v342_v56 = vld [vmem:[%s1465_s9 + $0x238] sm:$0xff]  ;;  %v757_v57 = vpack.c.bf16 %v304_v49, %v301_v48  ;;  %v307_v58 = vld [vmem:[%s1465_s9 + $0x120] sm:$0xff] }
  0x81   : > { %v811_v59 = vpack.c.bf16 %v342_v56, %v339_v54  ;;  %v291_v60 = vld [vmem:[%s1465_s9 + $0xa0] sm:$0xff]  ;;  %v294_v61 = vld [vmem:[%s1465_s9 + $0xb8] sm:$0xff]  ;;  %v759_v62 = vpack.c.bf16 %v311_v53, %v308_v52  ;;  %v345_v0 = vld [vmem:[%s1465_s9 + $0x250] sm:$0xff] }
  0x82   : > { %806 = vmatpush3.bf16.msra.mxu1 %v805_v42  ;;  %v310_v63 = vld [vmem:[%s1465_s9 + $0x138] sm:$0xff]  ;;  %v348_v1 = vld [vmem:[%s1465_s9 + $0x268] sm:$0xff]  ;;  %v317_v3 = vld [vmem:[%s1465_s9 + $0x170] sm:$0xff]  ;;  %v813_v4 = vpack.c.bf16 %v294_v61, %v291_v60 }
  0x83   : > { %750 = vmatpush1.bf16.msra.mxu0 %v749_v29  ;;  %808 = vmatprep.subr.bf16.mxu1 %v807_v50  ;;  %v314_v2 = vld [vmem:[%s1465_s9 + $0x158] sm:$0xff]  ;;  %v761_v5 = vpack.c.bf16 %v310_v63, %v307_v58  ;;  %v313_v6 = vld [vmem:[%s1465_s9 + $0x150] sm:$0xff]  ;;  %v815_v7 = vpack.c.bf16 %v348_v1, %v345_v0  ;;  %v300_v9 = vld [vmem:[%s1465_s9 + $0xe8] sm:$0xff] }
  0x84   : > { %752 = vmatprep.subr.bf16.mxu0 %v751_v34  ;;  %v297_v8 = vld [vmem:[%s1465_s9 + $0xd0] sm:$0xff]  ;;  %v763_v10 = vpack.c.bf16 %v317_v3, %v314_v2  ;;  %v316_v11 = vld [vmem:[%s1465_s9 + $0x168] sm:$0xff]  ;;  %v351_v12 = vld [vmem:[%s1465_s9 + $0x280] sm:$0xff] }
  0x85   : > { %v354_v13 = vld [vmem:[%s1465_s9 + $0x298] sm:$0xff]  ;;  %v320_v14 = vld [vmem:[%s1465_s9 + $0x188] sm:$0xff]  ;;  %v323_v15 = vld [vmem:[%s1465_s9 + $0x1a0] sm:$0xff]  ;;  %v817_v16 = vpack.c.bf16 %v300_v9, %v297_v8  ;;  %v765_v17 = vpack.c.bf16 %v316_v11, %v313_v6 }
  0x86   : > { %810 = vmatpush3.bf16.msra.mxu1 %v809_v55  ;;  %v319_v18 = vld [vmem:[%s1465_s9 + $0x180] sm:$0xff]  ;;  %v819_v19 = vpack.c.bf16 %v354_v13, %v351_v12  ;;  %v306_v21 = vld [vmem:[%s1465_s9 + $0x118] sm:$0xff]  ;;  %v767_v22 = vpack.c.bf16 %v323_v15, %v320_v14  ;;  %v357_v24 = vld [vmem:[%s1465_s9 + $0x2b0] sm:$0xff] }
  0x87   : > { %754 = vmatpush1.bf16.msra.mxu0 %v753_v43  ;;  %812 = vmatprep.subr.bf16.mxu1 %v811_v59  ;;  %v303_v20 = vld [vmem:[%s1465_s9 + $0x100] sm:$0xff]  ;;  %v322_v23 = vld [vmem:[%s1465_s9 + $0x198] sm:$0xff]  ;;  %v360_v25 = vld [vmem:[%s1465_s9 + $0x2c8] sm:$0xff] }
  0x88   : > { %756 = vmatprep.subr.bf16.mxu0 %v755_v47  ;;  %v326_v26 = vld [vmem:[%s1465_s9 + $0x1b8] sm:$0xff]  ;;  %v329_v27 = vld [vmem:[%s1465_s9 + $0x1d0] sm:$0xff]  ;;  %v821_v28 = vpack.c.bf16 %v306_v21, %v303_v20  ;;  %v268_v29 = vld [vmem:[%s1458_s23 + $0x8] sm:$0xff]  ;;  %v769_v30 = vpack.c.bf16 %v322_v23, %v319_v18  ;;  %v823_v32 = vpack.c.bf16 %v360_v25, %v357_v24  ;;  %v369_v20 = vlaneseq }
  0x89   : > { %v325_v31 = vld [vmem:[%s1465_s9 + $0x1b0] sm:$0xff]  ;;  %v312_v34 = vld [vmem:[%s1465_s9 + $0x148] sm:$0xff]  ;;  %v771_v35 = vpack.c.bf16 %v329_v27, %v326_v26  ;;  %v363_v37 = vld [vmem:[%s1465_s9 + $0x2e0] sm:$0xff]  ;;  %525 = vmatprep.mubr.f32.mxu1 %v268_v29  ;;  %448 = vmatprep.mubr.f32.mxu0 %v268_v29 }
  0x8a   : > { %814 = vmatpush3.bf16.msra.mxu1 %v813_v4  ;;  %v309_v33 = vld [vmem:[%s1465_s9 + $0x130] sm:$0xff]  ;;  %v328_v36 = vld [vmem:[%s1465_s9 + $0x1c8] sm:$0xff]  ;;  %v366_v38 = vld [vmem:[%s1465_s9 + $0x2f8] sm:$0xff]  ;;  %v370_v21 = vshrl.u32 %v369_v20, 7 }
  0x8b   : > { %758 = vmatpush1.bf16.msra.mxu0 %v757_v57  ;;  %816 = vmatprep.subr.bf16.mxu1 %v815_v7  ;;  %v332_v39 = vld [vmem:[%s1465_s9 + $0x1e8] sm:$0xff]  ;;  %v335_v40 = vld [vmem:[%s1465_s9 + $0x200] sm:$0xff]  ;;  %v825_v41 = vpack.c.bf16 %v312_v34, %v309_v33  ;;  %v773_v42 = vpack.c.bf16 %v328_v36, %v325_v31  ;;  %v827_v43 = vpack.c.bf16 %v366_v38, %v363_v37  ;;  %v318_v45 = vld [vmem:[%s1465_s9 + $0x178] sm:$0xff] }
  0x8c   : > { %760 = vmatprep.subr.bf16.mxu0 %v759_v62  ;;  %v315_v44 = vld [vmem:[%s1465_s9 + $0x160] sm:$0xff]  ;;  %v775_v46 = vpack.c.bf16 %v335_v40, %v332_v39  ;;  %v334_v48 = vld [vmem:[%s1465_s9 + $0x1f8] sm:$0xff]  ;;  %v341_v50 = vld [vmem:[%s1465_s9 + $0x230] sm:$0xff]  ;;  %v371_v33 = vsub.s32 0, %v370_v21  ;;  %v375_v34 = vsub.s32 1, %v370_v21 }
  0x8d   : > { %v331_v47 = vld [vmem:[%s1465_s9 + $0x1e0] sm:$0xff]  ;;  %v338_v49 = vld [vmem:[%s1465_s9 + $0x218] sm:$0xff]  ;;  %v829_v51 = vpack.c.bf16 %v318_v45, %v315_v44  ;;  %v337_v54 = vld [vmem:[%s1465_s9 + $0x210] sm:$0xff] }
  0x8e   : > { %818 = vmatpush3.bf16.msra.mxu1 %v817_v16  ;;  %v777_v52 = vpack.c.bf16 %v334_v48, %v331_v47  ;;  %v779_v53 = vpack.c.bf16 %v341_v50, %v338_v49  ;;  %v340_v55 = vld [vmem:[%s1465_s9 + $0x228] sm:$0xff]  ;;  %v347_v57 = vld [vmem:[%s1465_s9 + $0x260] sm:$0xff]  ;;  %v270_v60 = vld [vmem:[%s1458_s23 + $0x18] sm:$0xff] }
  0x8f   : > { %762 = vmatpush1.bf16.msra.mxu0 %v761_v5  ;;  %820 = vmatprep.subr.bf16.mxu1 %v819_v19  ;;  %v344_v56 = vld [vmem:[%s1465_s9 + $0x248] sm:$0xff]  ;;  %v267_v58 = vld [vmem:[%s1458_s23] sm:$0xff]  ;;  %v781_v59 = vpack.c.bf16 %v340_v55, %v337_v54  ;;  %v346_v63 = vld [vmem:[%s1465_s9 + $0x258] sm:$0xff] }
  0x90   : > { %764 = vmatprep.subr.bf16.mxu0 %v763_v10  ;;  %v783_v61 = vpack.c.bf16 %v347_v57, %v344_v56  ;;  %v343_v62 = vld [vmem:[%s1465_s9 + $0x240] sm:$0xff]  ;;  %v350_v0 = vld [vmem:[%s1465_s9 + $0x278] sm:$0xff]  ;;  %v353_v1 = vld [vmem:[%s1465_s9 + $0x290] sm:$0xff] }
  0x91   : > { %v269_v2 = vld [vmem:[%s1458_s23 + $0x10] sm:$0xff]  ;;  %v785_v3 = vpack.c.bf16 %v346_v63, %v343_v62  ;;  %v787_v4 = vpack.c.bf16 %v353_v1, %v350_v0  ;;  %v352_v6 = vld [vmem:[%s1465_s9 + $0x288] sm:$0xff]  ;;  %v359_v8 = vld [vmem:[%s1465_s9 + $0x2c0] sm:$0xff] }
  0x92   : > { %822 = vmatpush3.bf16.msra.mxu1 %v821_v28  ;;  %v349_v5 = vld [vmem:[%s1465_s9 + $0x270] sm:$0xff]  ;;  %v356_v7 = vld [vmem:[%s1465_s9 + $0x2a8] sm:$0xff]  ;;  %v355_v11 = vld [vmem:[%s1465_s9 + $0x2a0] sm:$0xff] }
  0x93   : > { %766 = vmatpush1.bf16.msra.mxu0 %v765_v17  ;;  %824 = vmatprep.subr.bf16.mxu1 %v823_v32  ;;  %v789_v9 = vpack.c.bf16 %v352_v6, %v349_v5  ;;  %v791_v10 = vpack.c.bf16 %v359_v8, %v356_v7  ;;  %v358_v12 = vld [vmem:[%s1465_s9 + $0x2b8] sm:$0xff]  ;;  %v365_v14 = vld [vmem:[%s1465_s9 + $0x2f0] sm:$0xff]  ;;  %v364_v18 = vld [vmem:[%s1465_s9 + $0x2e8] sm:$0xff] }
  0x94   : > { %768 = vmatprep.subr.bf16.mxu0 %v767_v22  ;;  %v362_v13 = vld [vmem:[%s1465_s9 + $0x2d8] sm:$0xff]  ;;  %v793_v15 = vpack.c.bf16 %v358_v12, %v355_v11  ;;  %v361_v17 = vld [vmem:[%s1465_s9 + $0x2d0] sm:$0xff]  ;;  %v379_v22 = vsub.s32 2, %v370_v21  ;;  %v367_v23 = vld [vmem:[%s263_s0] sm:$0x7]  ;;  %s1034_s9 = scalar_lea.vmem %s1579_s26, 768 }
  0x95   : > { %v795_v16 = vpack.c.bf16 %v365_v14, %v362_v13  ;;  %v797_v19 = vpack.c.bf16 %v364_v18, %v361_v17  ;;  %v376_v36 = vrot.slane %v367_v23, %v375_v34  ;;  %p1035_p1 = scmp.ne.s32.totalorder %s1579_s26, %s1034_s9  ;;  %p1042_p6 = scmp.lt.s32.totalorder %s1040_s27, %s1034_s9 }
  0x96   : > { %826 = vmatpush3.bf16.msra.mxu1 %v825_v41  ;;  %v380_v25 = vrot.slane %v367_v23, %v379_v22 }
  0x97   : > { %770 = vmatpush1.bf16.msra.mxu0 %v769_v30  ;;  %828 = vmatprep.subr.bf16.mxu1 %v827_v43  ;;  %p1036_p11 = pnand %p1035_p1, %p1702_p8  ;;  %p1043_p7 = por %p1042_p6, %p1041_p10 }
  0x98   : > { %772 = vmatprep.subr.bf16.mxu0 %v771_v35  ;;  %v372_v35 = vrot.slane %v367_v23, %v371_v33 }
  0x99   : > { %p1037_p0 = pneg %p1036_p11 }
  0x9a   : > { %830 = vmatpush3.bf16.msra.mxu1 %v829_v51 }
  0x9b   : > { %774 = vmatpush1.bf16.msra.mxu0 %v773_v42  ;;  %p1044_p2 = pnand %p1043_p7, %p1037_p0 }
  0x9c   : > { %776 = vmatprep.subr.bf16.mxu0 %v775_v46 }
  0x9d   : > { %526 = vmatmul.mubr.f32.vlgmr.msra.gmra.mrb[0].mxu1 %v267_v58 }
  0x9e   : > { %530 = vmatprep.mubr.f32.mxu1 %v270_v60 }
  0x9f   : > { %778 = vmatpush1.bf16.msra.mxu0 %v777_v52 }
  0xa0   : > { %780 = vmatprep.subr.bf16.mxu0 %v779_v53 }
  0xa1   : > { %531 = vmatmul.mubr.f32.gmra.mrb[2].mxu1 %v269_v2 }
  0xa3   : > { %782 = vmatpush1.bf16.msra.mxu0 %v781_v59 }
  0xa4   : > { %784 = vmatprep.subr.bf16.mxu0 %v783_v61 }
  0xa7   : > { %786 = vmatpush1.bf16.msra.mxu0 %v785_v3 }
  0xa8   : > { %788 = vmatprep.subr.bf16.mxu0 %v787_v4 }
  0xab   : > { %790 = vmatpush1.bf16.msra.mxu0 %v789_v9 }
  0xac   : > { %792 = vmatprep.subr.bf16.mxu0 %v791_v10 }
  0xaf   : > { %794 = vmatpush1.bf16.msra.mxu0 %v793_v15 }
  0xb0   : > { %796 = vmatprep.subr.bf16.mxu0 %v795_v16 }
  0xb3   : > { %798 = vmatpush1.bf16.msra.mxu0 %v797_v19 }
  0xb6   : > { %449 = vmatmul.mubr.f32.vlgmr.msra.gmra.mrb[0].mxu0 %v267_v58 }
  0xb7   : > { %454 = vmatprep.mubr.f32.mxu0 %v270_v60 }
  0xba   : > { %455 = vmatmul.mubr.f32.gmra.mrb[2].mxu0 %v269_v2 }
 0x170   : > { %v729_v24 = vpop.f32.mrb[0].mxu1 }
 0x171   : > { %v730_v26 = vpop.f32.mrb[1].mxu1 }
 0x172   : > { %v731_v27 = vadd.f32 %v730_v26, %v729_v24 }
 0x174   : > { %v528_v28 = vadd.f32 %v731_v27, %v380_v25  ;;  %v732_v29 = vpop.f32.mrb[2].mxu1 }
 0x175   : > { %v733_v30 = vpop.f32.mrb[3].mxu1 }
 0x176   : > { %538 = vst [vmem:[%s257_s22 + $0x10] sm:$0xff] %v528_v28  ;;  %v734_v31 = vadd.f32 %v733_v30, %v732_v29 }
 0x178   : > { %v533_v32 = vadd.f32 %v734_v31, %v380_v25 }
 0x17a   : > { %541 = vst [vmem:[%s257_s22 + $0x28] sm:$0xff] %v533_v32 }
 0x189   : > { %v450_v37 = vpop.f32.mrb[0].mxu0 }
 0x18a   : > { %v451_v38 = vadd.f32 %v450_v37, %v372_v35  ;;  %v452_v39 = vpop.f32.mrb[1].mxu0 }
 0x18b   : > { %v453_v40 = vadd.f32 %v452_v39, %v376_v36 }
 0x18c   : > { %536 = vst [vmem:[%s257_s22] sm:$0xff] %v451_v38 }
 0x18d   : > { %537 = vst [vmem:[%s257_s22 + $0x8] sm:$0xff] %v453_v40  ;;  %v456_v41 = vpop.f32.mrb[2].mxu0 }
 0x18e   : > { %v457_v42 = vadd.f32 %v456_v41, %v372_v35  ;;  %v458_v43 = vpop.f32.mrb[3].mxu0 }
 0x18f   : > { %v459_v44 = vadd.f32 %v458_v43, %v376_v36 }
 0x190   : > { %539 = vst [vmem:[%s257_s22 + $0x18] sm:$0xff] %v457_v42 }
 0x191   : > { %540 = vst [vmem:[%s257_s22 + $0x20] sm:$0xff] %v459_v44 }
 0x192   : > { %1047 = shalt.err (!%p1044_p2)
}
 0x193   : > { %s1048_s4 = scalar_lea.hbm %s1584_s15, 768  ;;  %s1052_s29 = scalar_lea.hbm %s1701_s6, 3072 }
 0x194   : > { %p1049_p9 = scmp.ne.s32.totalorder %s1584_s15, %s1048_s4  ;;  %p1053_p12 = scmp.lt.u32.totalorder %s1584_s15, %s1701_s6 }
 0x195   : > { %p1054_p13 = scmp.lt.u32.totalorder %s1052_s29, %s1048_s4  ;;  %p1056_p1 = scmp.lt.u32.totalorder %s1048_s4, %s1584_s15 }
 0x196   : > { %p1050_p4 = pnand %p1049_p9, %p1702_p8 }
 0x197   : > { %p1055_p3 = por %p1054_p13, %p1053_p12 }
 0x198   : > { %p1051_p5 = pneg %p1050_p4 }
 0x199   : > { %p1057_p11 = por %p1056_p1, %p1055_p3 }
 0x19b   : > { %p1058_p0 = pnand %p1057_p11, %p1051_p5 }
 0x19d   : > { %1061 = shalt.err (!%p1058_p0)
}
 0x19e   : > { %s1194_s18 = smov 384   ;;  %s1195_s7 = smov 768  }
 0x19f   : > { %s1196_s23 = smov 24  }
 0x1a0   : > { %839 = dma.vmem_to_hbm [thread:$0]  (%p1702_p8), %s1579_s26, 768, %s1584_s15, %s1588_s3, %s1194_s18, %s1195_s7, %s1196_s23  }
 0x1a1 PF: > { %p853_p10 = scmp.ge.s32.totalorder %s1184_s25, 2  ;;  %s574_s21 = sand.u32 1, %s1132_s12  }
 0x1a2   : > { %p1703_p6 = scmp.ne.s32.totalorder %s1690_s28, 0  ;;  %s575_s9 = scalar_lea.sflag [#allocation4], %s574_s21 }
 0x1a4   : > { %p849_p7 = pnand %p853_p10, %p1703_p6 }
 0x1a6   : > { %1127 = dma.done.wait (!%p849_p7), %s575_s9, 768  }
 0x1a7   : > { %1129 = vsyncadd (!%p849_p7), %s575_s9, 4294966528  ;;  %s22_s25 = sadd.s32 1, %s1184_s25   ;;  %s1705_s30 = sld [smem:[#allocation16_spill]] }
 0x1a8   : > { %p1617_p2 = scmp.ge.s32.totalorder %s22_s25, 6   ;;  %s1706_s26 = sld [smem:[#allocation15_spill]] }
 0x1a9   : > { %s1707_s21 = sld [smem:[#allocation11_spill]]  ;;  %s1708_s22 = sld [smem:[#allocation12_spill]] }
 0x1aa   : > { %s1709_s23 = sld [smem:[#allocation13_spill]]  ;;  %s1710_s24 = sld [smem:[#allocation14_spill]] }
 0x1ab   : > { %s1711_s12 = smov %s1136_s13  ;;  %s1712_s13 = smov %s1140_s14 }
 0x1ac   : > { %s1714_s15 = smov %s1148_s16  ;;  %s1715_s16 = smov %s1152_s17 }
 0x1ad   : > { %s1713_s14 = smov %s1705_s30  ;;  %s1716_s17 = smov %s1398_s5 }
 0x1ae   : > { %s1717_s18 = smov %s1160_s19  ;;  %s1718_s19 = smov %s1164_s20 }
 0x1af   : > { %s1719_s20 = smov %s1706_s26  ;;  %21 = sbr.rel (!%p1617_p2) target bundleno = 15 (0xf), region = 93 }
 0x1b6   :  { %580 = vsyncpa [#allocation3], 1 }
 0x1b7   :  { %582 = vsyncpa [#allocation3 + $0x1], 1 }
 0x1b8   :  { %583 = vsyncpa [#allocation6], 1 }
 0x1b9   :  { %585 = vsyncpa [#allocation6 + $0x1], 1 }
 0x1ba   :  { %586 = vsyncpa [#allocation4], 1 }
 0x1bb   :  { %588 = vsyncpa [#allocation4 + $0x1], 1 }

</bundles_post_ra>
